<compile_context>
chip_gen: v6e
topology: v6e:2x2x1
jax: 0.10.0
libtpu: 0.0.40
codegen_flags: <defaults>
</compile_context>

<pallas_src>
import jax
import jax.numpy as jnp
from jax.experimental import pallas as pl
from jax.experimental.pallas import tpu as pltpu


def _linear_softmax(x0, x1, w_ref, b_ref):
    """x0, x1: batch-on-lanes tiles; w_ref (2,3) / b_ref (3,) scalars in SMEM."""
    # Linear(2,3) as 6 scalar-broadcast FMAs on the VPU.
    l0 = x0 * w_ref[0, 0] + x1 * w_ref[1, 0] + b_ref[0]
    l1 = x0 * w_ref[0, 1] + x1 * w_ref[1, 1] + b_ref[1]
    l2 = x0 * w_ref[0, 2] + x1 * w_ref[1, 2] + b_ref[2]
    # Numerically stable softmax over the 3 feature rows — pure elementwise.
    m = jnp.maximum(l0, jnp.maximum(l1, l2))
    e0 = jnp.exp(l0 - m)
    e1 = jnp.exp(l1 - m)
    e2 = jnp.exp(l2 - m)
    # Exact reciprocal: approx=True (~2.4e-4 rel err) would fail the 1e-5 check.
    # (On v7x, approx=True moves the divide fully onto the EUP slot if the
    #  accuracy budget is ever relaxed.)
    inv = pl.reciprocal(e0 + e1 + e2, approx=False)
    return e0 * inv, e1 * inv, e2 * inv


def simple_nn_kernel_lanes3d(x_ref, w_ref, b_ref, o_ref):
    # x_ref: (2, S, 128) f32 VMEM (fully packed vregs), o_ref: (3, S, 128) f32.
    p0, p1, p2 = _linear_softmax(x_ref[0:1, :, :], x_ref[1:2, :, :], w_ref, b_ref)
    o_ref[0:1, :, :] = p0.astype(o_ref.dtype)
    o_ref[1:2, :, :] = p1.astype(o_ref.dtype)
    o_ref[2:3, :, :] = p2.astype(o_ref.dtype)


def simple_nn_kernel_lanes2d(x_ref, w_ref, b_ref, o_ref):
    # x_ref: (2, TB) f32 VMEM (sublane-padded), o_ref: (3, TB) f32.
    p0, p1, p2 = _linear_softmax(x_ref[0:1, :], x_ref[1:2, :], w_ref, b_ref)
    o_ref[0:1, :] = p0.astype(o_ref.dtype)
    o_ref[1:2, :] = p1.astype(o_ref.dtype)
    o_ref[2:3, :] = p2.astype(o_ref.dtype)


def simple_nn_forward_fb(x_fb, w, b, *, max_rows_per_step=1024,
                         max_lanes_per_step=64 * 1024):
    """Fast path in (features, batch) layout: x_fb (2, B) -> probs (3, B).

    Zero wrapper-side layout ops.  w is (in_features, out_features) = (2, 3)
    (i.e. torch's fc1.weight transposed), b is (3,).
    """
    assert x_fb.shape[0] == 2 and w.shape == (2, 3) and b.shape == (3,)
    B = x_fb.shape[1]
    smem_specs = [
        pl.BlockSpec(memory_space=pltpu.SMEM),   # full 2x3 weights in SMEM
        pl.BlockSpec(memory_space=pltpu.SMEM),   # full bias in SMEM
    ]
    compiler_params = pltpu.CompilerParams(
        # Shard batch tiles across v7x's two TensorCores; harmless elsewhere.
        dimension_semantics=("parallel",),
    )

    if B % 128 == 0:
        # Lane-dense 3-D path: (2, B) -> (2, S, 128) is a free contiguous
        # regroup; blocks are fully packed (8,128) vregs, no sublane padding.
        S = B // 128
        s_tile = min(max_rows_per_step, S)
        if s_tile < S:
            s_tile = max(8, (s_tile // 8) * 8)      # keep (8,128) divisibility
        x3 = x_fb.reshape(2, S, 128)
        out3 = pl.pallas_call(
            simple_nn_kernel_lanes3d,
            out_shape=jax.ShapeDtypeStruct((3, S, 128), jnp.float32),
            grid_spec=pltpu.PrefetchScalarGridSpec(
                num_scalar_prefetch=0,
                grid=(pl.cdiv(S, s_tile),),          # no pad: partial block clamped
                in_specs=[pl.BlockSpec((2, s_tile, 128), lambda i: (0, i, 0))]
                + smem_specs,
                out_specs=pl.BlockSpec((3, s_tile, 128), lambda i: (0, i, 0)),
            ),
            compiler_params=compiler_params,
        )(x3, w, b)
        return out3.reshape(3, B)

    # Ragged-B fallback: 2-D blocks (sublanes padded 2->8 / 3->8 in VMEM), so
    # cap the lane tile at 64K (~8 MiB double-buffered, fits v5e's 16 MiB
    # scoped-VMEM default and v7x's 32 MiB).
    tb = min(max_lanes_per_step, B)
    if tb < B:
        tb = max(128, (tb // 128) * 128)
    return pl.pallas_call(
        simple_nn_kernel_lanes2d,
        out_shape=jax.ShapeDtypeStruct((3, B), jnp.float32),
        grid_spec=pltpu.PrefetchScalarGridSpec(
            num_scalar_prefetch=0,
            grid=(pl.cdiv(B, tb),),                  # no pad: partial block clamped
            in_specs=[pl.BlockSpec((2, tb), lambda i: (0, i))] + smem_specs,
            out_specs=pl.BlockSpec((3, tb), lambda i: (0, i)),
        ),
        compiler_params=compiler_params,
    )(x_fb, w, b)


def simple_nn_forward(x, w, b, *, min_pallas_batch=4096):
    """PyTorch-compatible entry point: x (B, 2) f32 -> (B, 3) softmax probs.

    NOTE: the (B,2)->(2,B) and (3,B)->(B,3) transposes here are extra strided
    HBM passes; callers that can produce/consume the (features, batch) layout
    should call simple_nn_forward_fb directly.  Batches below min_pallas_batch
    use the fused XLA path (pallas_call fixed overhead + layout conversion
    dominates there); pass min_pallas_batch=0 to force the Pallas kernel.
    """
    B = x.shape[0]
    if B < min_pallas_batch:
        return jax.nn.softmax(x @ w + b[None, :], axis=1)
    return simple_nn_forward_fb(x.T, w, b).T


def _reference(x, w, b):
    return jax.nn.softmax(x @ w + b[None, :], axis=1)


if __name__ == "__main__":
    key = jax.random.PRNGKey(0)
    kx, kw, kb = jax.random.split(key, 3)

    # Deterministic params (mimic nn.Linear's uniform(-1/sqrt(fan_in), +) init).
    bound = 1.0 / jnp.sqrt(2.0)
    w = jax.random.uniform(kw, (2, 3), minval=-bound, maxval=bound, dtype=jnp.float32)
    b = jax.random.uniform(kb, (3,), minval=-bound, maxval=bound, dtype=jnp.float32)

    # 1) Small batch, module-shaped (B, 2) input, Pallas path forced.
    B = 8
    x = jax.random.normal(kx, (B, 2), dtype=jnp.float32)
    out = jax.block_until_ready(simple_nn_forward(x, w, b, min_pallas_batch=0))
    ref = _reference(x, w, b)
    assert out.shape == (B, 3)
    assert jnp.allclose(out, ref, atol=1e-5, rtol=1e-5), "mismatch vs reference (B=8)"
    assert jnp.allclose(jnp.sum(out, axis=1), 1.0, atol=1e-5), "rows must sum to 1"

    # 2) (features, batch) fast path, B a multiple of 128 -> lane-dense 3-D blocks,
    #    zero wrapper layout ops.
    B2 = 1024
    x2_fb = jax.random.normal(kx, (2, B2), dtype=jnp.float32)
    out2_fb = jax.block_until_ready(simple_nn_forward_fb(x2_fb, w, b))
    ref2 = _reference(x2_fb.T, w, b)
    assert out2_fb.shape == (3, B2)
    assert jnp.allclose(out2_fb.T, ref2, atol=1e-5, rtol=1e-5), "mismatch (fb path)"

    # 3) Ragged batch (not a multiple of 128): cdiv grid + clamped partial block,
    #    no materialized pad of x.
    B3 = 2500
    x3 = jax.random.normal(kx, (B3, 2), dtype=jnp.float32)
    out3 = jax.block_until_ready(simple_nn_forward(x3, w, b, min_pallas_batch=0))
    ref3 = _reference(x3, w, b)
    assert out3.shape == (B3, 3)
    assert jnp.allclose(out3, ref3, atol=1e-5, rtol=1e-5), "mismatch vs reference (ragged)"

    print("KERNEL_OK")
</pallas_src>

<mosaic_0001>
module attributes {stable_mosaic.version = 11 : i64} {
  func.func @simple_nn_kernel_lanes2d(%arg0: i32, %arg1: memref<2x8xf32, #tpu.memory_space<vmem>>, %arg2: memref<2x3xf32, #tpu.memory_space<smem>>, %arg3: memref<3xf32, #tpu.memory_space<smem>>, %arg4: memref<3x8xf32, #tpu.memory_space<vmem>>) attributes {dimension_semantics = [#tpu.dimension_semantics<parallel>], iteration_bounds = array<i64: 1>, scalar_prefetch = 0 : i64, scratch_operands = 0 : i64, tpu.core_type = #tpu.core_type<tc>, window_params = [{transform_indices = @transform_0, window_bounds = array<i64: 2, 8>}, {transform_indices = @transform_1, window_bounds = array<i64: 2, 3>}, {transform_indices = @transform_2, window_bounds = array<i64: 3>}, {transform_indices = @transform_3, window_bounds = array<i64: 3, 8>}]} {
    %c0 = arith.constant 0 : index
    %c0_0 = arith.constant 0 : index
    %0 = vector.load %arg1[%c0, %c0_0] : memref<2x8xf32, #tpu.memory_space<vmem>>, vector<1x8xf32>
    %c1 = arith.constant 1 : index
    %c0_1 = arith.constant 0 : index
    %1 = vector.load %arg1[%c1, %c0_1] : memref<2x8xf32, #tpu.memory_space<vmem>>, vector<1x8xf32>
    %c0_2 = arith.constant 0 : index
    %c0_3 = arith.constant 0 : index
    %2 = memref.load %arg2[%c0_2, %c0_3] : memref<2x3xf32, #tpu.memory_space<smem>>
    %3 = vector.broadcast %2 : f32 to vector<1x8xf32>
    %4 = arith.mulf %0, %3 : vector<1x8xf32>
    %c1_4 = arith.constant 1 : index
    %c0_5 = arith.constant 0 : index
    %5 = memref.load %arg2[%c1_4, %c0_5] : memref<2x3xf32, #tpu.memory_space<smem>>
    %6 = vector.broadcast %5 : f32 to vector<1x8xf32>
    %7 = arith.mulf %1, %6 : vector<1x8xf32>
    %8 = arith.addf %4, %7 : vector<1x8xf32>
    %c0_6 = arith.constant 0 : index
    %9 = memref.load %arg3[%c0_6] : memref<3xf32, #tpu.memory_space<smem>>
    %10 = vector.broadcast %9 : f32 to vector<1x8xf32>
    %11 = arith.addf %8, %10 : vector<1x8xf32>
    %c0_7 = arith.constant 0 : index
    %c1_8 = arith.constant 1 : index
    %12 = memref.load %arg2[%c0_7, %c1_8] : memref<2x3xf32, #tpu.memory_space<smem>>
    %13 = vector.broadcast %12 : f32 to vector<1x8xf32>
    %14 = arith.mulf %0, %13 : vector<1x8xf32>
    %c1_9 = arith.constant 1 : index
    %c1_10 = arith.constant 1 : index
    %15 = memref.load %arg2[%c1_9, %c1_10] : memref<2x3xf32, #tpu.memory_space<smem>>
    %16 = vector.broadcast %15 : f32 to vector<1x8xf32>
    %17 = arith.mulf %1, %16 : vector<1x8xf32>
    %18 = arith.addf %14, %17 : vector<1x8xf32>
    %c1_11 = arith.constant 1 : index
    %19 = memref.load %arg3[%c1_11] : memref<3xf32, #tpu.memory_space<smem>>
    %20 = vector.broadcast %19 : f32 to vector<1x8xf32>
    %21 = arith.addf %18, %20 : vector<1x8xf32>
    %c0_12 = arith.constant 0 : index
    %c2 = arith.constant 2 : index
    %22 = memref.load %arg2[%c0_12, %c2] : memref<2x3xf32, #tpu.memory_space<smem>>
    %23 = vector.broadcast %22 : f32 to vector<1x8xf32>
    %24 = arith.mulf %0, %23 : vector<1x8xf32>
    %c1_13 = arith.constant 1 : index
    %c2_14 = arith.constant 2 : index
    %25 = memref.load %arg2[%c1_13, %c2_14] : memref<2x3xf32, #tpu.memory_space<smem>>
    %26 = vector.broadcast %25 : f32 to vector<1x8xf32>
    %27 = arith.mulf %1, %26 : vector<1x8xf32>
    %28 = arith.addf %24, %27 : vector<1x8xf32>
    %c2_15 = arith.constant 2 : index
    %29 = memref.load %arg3[%c2_15] : memref<3xf32, #tpu.memory_space<smem>>
    %30 = vector.broadcast %29 : f32 to vector<1x8xf32>
    %31 = arith.addf %28, %30 : vector<1x8xf32>
    %32 = arith.maximumf %21, %31 : vector<1x8xf32>
    %33 = arith.maximumf %11, %32 : vector<1x8xf32>
    %34 = arith.subf %11, %33 : vector<1x8xf32>
    %35 = math.exp %34 : vector<1x8xf32>
    %36 = arith.subf %21, %33 : vector<1x8xf32>
    %37 = math.exp %36 : vector<1x8xf32>
    %38 = arith.subf %31, %33 : vector<1x8xf32>
    %39 = math.exp %38 : vector<1x8xf32>
    %40 = arith.addf %35, %37 : vector<1x8xf32>
    %41 = arith.addf %40, %39 : vector<1x8xf32>
    %42 = tpu.reciprocal %41 : vector<1x8xf32> -> vector<1x8xf32>
    %43 = arith.mulf %35, %42 : vector<1x8xf32>
    %44 = arith.mulf %37, %42 : vector<1x8xf32>
    %45 = arith.mulf %39, %42 : vector<1x8xf32>
    %c0_16 = arith.constant 0 : index
    %c0_17 = arith.constant 0 : index
    %46 = vector.load %arg4[%c0_16, %c0_17] : memref<3x8xf32, #tpu.memory_space<vmem>>, vector<1x8xf32>
    tpu.vector_store %arg4[%c0_16, %c0_17], %43 {strides = array<i32>} : memref<3x8xf32, #tpu.memory_space<vmem>>, vector<1x8xf32>,
    %c1_18 = arith.constant 1 : index
    %c0_19 = arith.constant 0 : index
    %47 = vector.load %arg4[%c1_18, %c0_19] : memref<3x8xf32, #tpu.memory_space<vmem>>, vector<1x8xf32>
    tpu.vector_store %arg4[%c1_18, %c0_19], %44 {strides = array<i32>} : memref<3x8xf32, #tpu.memory_space<vmem>>, vector<1x8xf32>,
    %c2_20 = arith.constant 2 : index
    %c0_21 = arith.constant 0 : index
    %48 = vector.load %arg4[%c2_20, %c0_21] : memref<3x8xf32, #tpu.memory_space<vmem>>, vector<1x8xf32>
    tpu.vector_store %arg4[%c2_20, %c0_21], %45 {strides = array<i32>} : memref<3x8xf32, #tpu.memory_space<vmem>>, vector<1x8xf32>,
    return
  }
  func.func @transform_0(%arg0: i32) -> (i32, i32) {
    %c0_i32 = arith.constant 0 : i32
    %c0_i32_0 = arith.constant 0 : i32
    return %c0_i32, %arg0 : i32, i32
  }
  func.func @transform_1(%arg0: i32) -> (i32, i32) {
    %c0_i32 = arith.constant 0 : i32
    %c0_i32_0 = arith.constant 0 : i32
    %c0_i32_1 = arith.constant 0 : i32
    return %c0_i32, %c0_i32_0 : i32, i32
  }
  func.func @transform_2(%arg0: i32) -> i32 {
    %c0_i32 = arith.constant 0 : i32
    %c0_i32_0 = arith.constant 0 : i32
    return %c0_i32 : i32
  }
  func.func @transform_3(%arg0: i32) -> (i32, i32) {
    %c0_i32 = arith.constant 0 : i32
    %c0_i32_0 = arith.constant 0 : i32
    return %c0_i32, %arg0 : i32, i32
  }
}

</mosaic_0001>

<bundles_post_ra>
// kernel: tpu_custom_call.1
= control target key start
LH: loop header
LB: loop body
LE: loop exit
PB: predicated region body
PF: predicated region fallthrough
CT: control target
= control target key end

     0   :  { %8 = vsyncpa [#allocation3], 0  ;;  %s243_s0 = inlined_call_operand.hbm [shape: f32[2,8], index: 0, kind: input, shape index: {}]   ;;  %s244_s1 = inlined_call_operand.hbm [shape: f32[2,3], index: 1, kind: input, shape index: {}]   ;;  %s245_s2 = inlined_call_operand.vmem [shape: f32[3], index: 2, kind: input, shape index: {}]   ;;  %s246_s3 = inlined_call_operand.hbm [shape: f32[3,8], index: 3, kind: output, shape index: {}]  }
   0x1   :  { %9 = vsyncpa [#allocation5], 0 }
   0x2   :  { %10 = vsyncpa [#allocation6], 0 }
   0x3   :  { %11 = vsyncpa [#allocation4], 0  ;;  %s207_s12 = smov [#allocation2]   ;;  %s36_s16 = sshll.u32 %s245_s2, 4  ;;  %s37_s16 = int_to_ptr.vmem [resolvable:$true] %s36_s16 }
   0x4   :  { %s18_s13 = sshll.u32 %s207_s12, 4  ;;  %s19_s13 = int_to_ptr.vmem [resolvable:$true] %s18_s13 }
   0x5   :  { %s147_s17 = scalar_lea.vmem %s19_s13, 32  ;;  %p152_p1 = scmp.lt.s32.totalorder %s19_s13, %s19_s13 }
   0x6   :  { %p148_p0 = scmp.ne.s32.totalorder %s19_s13, %s147_s17  ;;  %p153_p2 = scmp.lt.s32.totalorder %s147_s17, %s147_s17 }
   0x8   :  { %p154_p3 = por %p153_p2, %p152_p1 }
   0xa   :  { %p155_p4 = pnand %p154_p3, %p148_p0 }
   0xc   :  { %158 = shalt.err (!%p155_p4)
}
   0xd   :  { %21 = dma.hbm_to_vmem [thread:$0]  %s243_s0, 32, %s19_s13, [#allocation3]  }
   0xe   :  { %s208_s20 = smov [#allocation7]   ;;  %s167_s23 = scalar_lea.vmem %s37_s16, 16 }
   0xf   :  { %29 = dma.hbm_to_smem %s244_s1, 32, %s208_s20, [#allocation5]  }
  0x10   :  { %p168_p5 = scmp.ne.s32.totalorder %s37_s16, %s167_s23  ;;  %p172_p6 = scmp.lt.s32.totalorder %s37_s16, %s37_s16 }
  0x11   :  { %p173_p7 = scmp.lt.s32.totalorder %s167_s23, %s167_s23 }
  0x13   :  { %p174_p8 = por %p173_p7, %p172_p6 }
  0x15   :  { %p175_p9 = pnand %p174_p8, %p168_p5 }
  0x17   :  { %178 = shalt.err (!%p175_p9)
}
  0x18   :  { %s209_s2 = smov [#allocation8]  }
  0x19   :  { %39 = dma.vmem_to_smem %s37_s16, 16, %s209_s2, [#allocation6]  }
  0x1a   :  { %199 = dma.done.wait [#allocation3], 32  }
  0x1b   :  { %200 = vsyncadd [#allocation3], 4294967264 }
  0x1c   :  { %201 = dma.done.wait [#allocation5], 32  }
  0x1d   :  { %202 = vsyncadd [#allocation5], 4294967264 }
  0x1e   :  { %203 = dma.done.wait [#allocation6], 16  }
  0x1f   :  { %204 = vsyncadd [#allocation6], 4294967280 }
  0x20   :  { %49 = sfence }
  0x21   :  { %s52_s0 = sld [smem:[#allocation7]]  ;;  %v50_v0 = vld [vmem:[#allocation2] sm:$0x1]  ;;  %v51_v3 = vld [vmem:[#allocation2 + $0x1] sm:$0x1]  ;;  %s210_s4 = smov [#allocation9]  }
  0x22   :  { %s120_s24 = sld [smem:[#allocation7 + $0x80]]  ;;  %s109_s5 = sshll.u32 %s210_s4, 4  ;;  %vm99_vm0 = vcmask 57344   ;;  %s110_s5 = int_to_ptr.vmem [resolvable:$true] %s109_s5 }
  0x23   :  { %s59_s25 = sld [smem:[#allocation8]]  ;;  %s179_s6 = scalar_lea.vmem %s110_s5, 64 }
  0x24   :  { %s121_s1 = sld [smem:[#allocation7 + $0x1]]  ;;  %p180_p10 = scmp.ne.s32.totalorder %s110_s5, %s179_s6 }
  0x25   :  { %s122_s26 = sld [smem:[#allocation7 + $0x81]]  ;;  %p184_p11 = scmp.lt.s32.totalorder %s110_s5, %s110_s5 }
  0x26   :  { %s123_s27 = sld [smem:[#allocation8 + $0x1]]  ;;  %p185_p12 = scmp.lt.s32.totalorder %s179_s6, %s179_s6 }
  0x27   :  { %s124_s28 = sld [smem:[#allocation7 + $0x2]]  ;;  %v53_v1 = vstv %s52_s0 }
  0x28   :  { %v56_v2 = vstv %s120_s24  ;;  %s125_s29 = sld [smem:[#allocation7 + $0x82]]  ;;  %v54_v5 = vmul.f32 %v53_v1, %v50_v0  ;;  %p186_p13 = por %p185_p12, %p184_p11 }
  0x29   :  { %s126_s30 = sld [smem:[#allocation8 + $0x2]]  ;;  %v57_v6 = vmul.f32 %v56_v2, %v51_v3  ;;  %v60_v17 = vstv %s59_s25 }
  0x2a   :  { %v63_v4 = vstv %s121_s1  ;;  %p187_p0 = pnand %p186_p13, %p180_p10 }
  0x2b   :  { %v64_v7 = vmul.f32 %v63_v4, %v50_v0  ;;  %v66_v8 = vstv %s122_s26  ;;  %v58_v15 = vadd.f32 %v57_v6, %v54_v5 }
  0x2c   :  { %v67_v9 = vmul.f32 %v66_v8, %v51_v3  ;;  %v70_v12 = vstv %s123_s27 }
  0x2d   :  { %v73_v10 = vstv %s124_s28  ;;  %v61_v21 = vadd.f32 %v60_v17, %v58_v15 }
  0x2e   :  { %v68_v11 = vadd.f32 %v67_v9, %v64_v7  ;;  %v74_v13 = vmul.f32 %v73_v10, %v50_v0  ;;  %v76_v14 = vstv %s125_s29 }
  0x2f   :  { %v77_v16 = vmul.f32 %v76_v14, %v51_v3  ;;  %v80_v18 = vstv %s126_s30 }
  0x30   :  { %v71_v19 = vadd.f32 %v70_v12, %v68_v11 }
  0x31   :  { %v78_v20 = vadd.f32 %v77_v16, %v74_v13 }
  0x33   :  { %v81_v22 = vadd.f32 %v80_v18, %v78_v20 }
  0x35   :  { %v82_v23 = vmax.f32 %v71_v19, %v81_v22 }
  0x37   :  { %v83_v24 = vmax.f32 %v61_v21, %v82_v23 }
  0x39   :  { %v84_v25 = vsub.f32 %v61_v21, %v83_v24  ;;  %v87_v26 = vsub.f32 %v71_v19, %v83_v24  ;;  %v90_v27 = vsub.f32 %v81_v22, %v83_v24 }
  0x3b   :  { %v85_v28 = vmul.f32 1.442695, %v84_v25  ;;  %v88_v29 = vmul.f32 1.442695, %v87_v26  ;;  %v91_v30 = vmul.f32 1.442695, %v90_v27 }
  0x3d   :  { %131 = vpow2.f32 %v85_v28 }
  0x3e   :  { %133 = vpow2.f32 %v88_v29 }
  0x3f   :  { %135 = vpow2.f32 %v91_v30 }
  0x4a   :  { %v132_v31 = vpop.eup %131 }
  0x4b   :  { %v134_v32 = vpop.eup %133 }
  0x4c   :  { %v136_v33 = vpop.eup %135  ;;  %v93_v34 = vadd.f32 %v134_v32, %v132_v31 }
  0x4e   :  { %v94_v35 = vadd.f32 %v136_v33, %v93_v34 }
  0x50   :  { %137 = vrcp.f32 %v94_v35 }
  0x5d   :  { %v138_v36 = vpop.eup %137 }
  0x5e   :  { %v96_v37 = vmul.f32 %v138_v36, %v132_v31  ;;  %v97_v38 = vmul.f32 %v138_v36, %v134_v32  ;;  %v98_v39 = vmul.f32 %v138_v36, %v136_v33 }
  0x60   :  { %100 = vst.msk [vmem:[#allocation9] sm:$0x1] %vm99_vm0, %v96_v37  ;;  %101 = vst.msk [vmem:[#allocation9 + $0x1] sm:$0x1] %vm99_vm0, %v97_v38 }
  0x61   :  { %102 = vst.msk [vmem:[#allocation9 + $0x2] sm:$0x1] %vm99_vm0, %v98_v39 }
  0x62   :  { %190 = shalt.err (!%p187_p0)
}
  0x63   :  { %112 = dma.vmem_to_hbm [thread:$0]  %s110_s5, 64, %s246_s3, [#allocation4]  }
  0x64   :  { %205 = dma.done.wait [#allocation4], 64  }
  0x65   :  { %206 = vsyncadd [#allocation4], 4294967232 }
  0x66   :  { %116 = vsyncpa [#allocation3], 1 }
  0x67   :  { %117 = vsyncpa [#allocation4], 1 }
  0x68   :  { %118 = vsyncpa [#allocation5], 1 }
  0x69   :  { %119 = vsyncpa [#allocation6], 1 }

</bundles_post_ra>
